<compile_context>
chip_gen: v6e
topology: v6e:2x2x1
jax: 0.10.0
libtpu: 0.0.40
codegen_flags: <defaults>
</compile_context>

<pallas_src>
import functools

import jax
import jax.numpy as jnp
from jax.experimental import pallas as pl
from jax.experimental.pallas import tpu as pltpu


_VMEM_LIMIT = 32 * 1024 * 1024          # raise v5e's 16 MiB default; safe on v6e/v7x
_MAX_BLOCK_BYTES = 4 << 20              # per-block budget (double-buffered in + out fits easily)


# ---------------------------------------------------------------------------
# Pallas kernels
# ---------------------------------------------------------------------------

def _pool_mean_kernel(x_ref, o_ref, *, inv_hw):
    # x_ref: (tile_rows, HW) -> per-row spatial mean (tile_rows, 1)
    o_ref[...] = jnp.sum(x_ref[...], axis=-1, keepdims=True) * inv_hw


def _se_mlp_kernel(p_ref, w1_ref, w2_ref, y_ref):
    # pooled (B, C) @ w1 (C, hidden) -> ReLU -> @ w2 (hidden, C) -> sigmoid
    h = jnp.dot(p_ref[...], w1_ref[...], preferred_element_type=jnp.float32)
    h = jnp.maximum(h, 0.0)
    z = jnp.dot(h, w2_ref[...], preferred_element_type=jnp.float32)
    y_ref[...] = (1.0 / (1.0 + jnp.exp(-z))).astype(y_ref.dtype)


def _scale_kernel(x_ref, s_ref, o_ref):
    # x (tile_rows, HW) * s (tile_rows, 1) broadcast over lanes
    o_ref[...] = x_ref[...] * s_ref[...]


# ---------------------------------------------------------------------------
# Wrappers
# ---------------------------------------------------------------------------

def _pick_row_tile(n_rows, row_bytes, *, max_block_bytes=_MAX_BLOCK_BYTES, min_tiles=2):
    """Largest divisor of n_rows that fits the VMEM budget, is sublane-aligned
    (multiple of 8 or equal to n_rows), and if possible yields >= min_tiles
    grid steps so the 'parallel' axis can be sharded across v7x's 2 TCs."""
    def ok(t, need_min_tiles):
        if n_rows % t:
            return False
        if t != n_rows and t % 8:
            return False
        if t * row_bytes > max_block_bytes:
            return False
        if need_min_tiles and (n_rows // t) < min_tiles:
            return False
        return True

    for t in range(n_rows, 0, -1):
        if ok(t, True):
            return t
    for t in range(n_rows, 0, -1):
        if ok(t, False):
            return t
    return n_rows


def pool_mean_pallas(x2d, *, tile_rows):
    n_rows, hw = x2d.shape
    kernel = functools.partial(_pool_mean_kernel, inv_hw=1.0 / hw)
    return pl.pallas_call(
        kernel,
        out_shape=jax.ShapeDtypeStruct((n_rows, 1), jnp.float32),
        grid_spec=pltpu.PrefetchScalarGridSpec(
            num_scalar_prefetch=0,
            grid=(n_rows // tile_rows,),
            in_specs=[pl.BlockSpec((tile_rows, hw), lambda i: (i, 0))],
            out_specs=pl.BlockSpec((tile_rows, 1), lambda i: (i, 0)),
        ),
        compiler_params=pltpu.CompilerParams(
            dimension_semantics=("parallel",),
            vmem_limit_bytes=_VMEM_LIMIT),
    )(x2d)


def se_mlp_pallas(pooled, w1_t, w2_t):
    b, c = pooled.shape
    hidden = w1_t.shape[1]
    return pl.pallas_call(
        _se_mlp_kernel,
        out_shape=jax.ShapeDtypeStruct((b, c), jnp.float32),
        grid_spec=pltpu.PrefetchScalarGridSpec(
            num_scalar_prefetch=0,
            grid=(1,),
            in_specs=[
                pl.BlockSpec((b, c), lambda i: (0, 0)),
                pl.BlockSpec((c, hidden), lambda i: (0, 0)),   # weight resident
                pl.BlockSpec((hidden, c), lambda i: (0, 0)),   # weight resident
            ],
            out_specs=pl.BlockSpec((b, c), lambda i: (0, 0)),
        ),
        compiler_params=pltpu.CompilerParams(
            dimension_semantics=("arbitrary",),
            vmem_limit_bytes=_VMEM_LIMIT),
    )(pooled, w1_t, w2_t)


def scale_mul_pallas(x2d, scale2d, *, tile_rows):
    n_rows, hw = x2d.shape
    return pl.pallas_call(
        _scale_kernel,
        out_shape=jax.ShapeDtypeStruct((n_rows, hw), jnp.float32),
        grid_spec=pltpu.PrefetchScalarGridSpec(
            num_scalar_prefetch=0,
            grid=(n_rows // tile_rows,),
            in_specs=[
                pl.BlockSpec((tile_rows, hw), lambda i: (i, 0)),
                pl.BlockSpec((tile_rows, 1), lambda i: (i, 0)),
            ],
            out_specs=pl.BlockSpec((tile_rows, hw), lambda i: (i, 0)),
        ),
        compiler_params=pltpu.CompilerParams(
            dimension_semantics=("parallel",),
            vmem_limit_bytes=_VMEM_LIMIT),
    )(x2d, scale2d)


# ---------------------------------------------------------------------------
# SELayer module (matches the PyTorch forward: avg-pool -> fc -> relu -> fc ->
# sigmoid -> channel-wise rescale). Linear layers have no bias.
# ---------------------------------------------------------------------------

class SELayerPallas:
    def __init__(self, channel, reduction=16, *, key):
        hidden = channel // reduction
        assert hidden >= 1, "channel // reduction must be >= 1"
        k1, k2 = jax.random.split(key)
        # nn.Linear default init: kaiming_uniform(a=sqrt(5)) => U(-1/sqrt(fan_in), +)
        b1 = 1.0 / (channel ** 0.5)
        b2 = 1.0 / (hidden ** 0.5)
        # stored pre-transposed (in, out) -> no runtime transpose in __call__
        self.w1_t = jax.random.uniform(k1, (channel, hidden), jnp.float32, -b1, b1)
        self.w2_t = jax.random.uniform(k2, (hidden, channel), jnp.float32, -b2, b2)
        self.channel = channel
        self.hidden = hidden

    def __call__(self, x):
        # x: (B, C, H, W) float32, NCHW
        B, C, H, W = x.shape
        HW = H * W
        x2d = x.reshape(B * C, HW)                    # free reshape (contiguous), no transpose
        tile = _pick_row_tile(B * C, HW * 4)

        pooled = pool_mean_pallas(x2d, tile_rows=tile)        # (B*C, 1) spatial means
        pooled = pooled.reshape(B, C)                          # free reshape

        gate = se_mlp_pallas(pooled, self.w1_t, self.w2_t)     # (B, C) sigmoid gates
        gate = gate.reshape(B * C, 1)                          # free reshape

        out2d = scale_mul_pallas(x2d, gate, tile_rows=tile)    # (B*C, HW)
        return out2d.reshape(B, C, H, W).astype(x.dtype)


# ---------------------------------------------------------------------------
# pure-JAX reference (same math, no Pallas) for a sanity check
# ---------------------------------------------------------------------------

def reference_forward(module, x):
    y = jnp.mean(x, axis=(2, 3))                               # (B, C)
    h = jnp.maximum(y @ module.w1_t, 0.0)
    s = 1.0 / (1.0 + jnp.exp(-(h @ module.w2_t)))
    return x * s[:, :, None, None]


if __name__ == "__main__":
    key = jax.random.PRNGKey(0)
    k_w, k_x = jax.random.split(key)

    # channel must be >= reduction for a non-degenerate bottleneck (PyTorch would
    # build a 0-width Linear for channel=4, reduction=16), so use channel=64.
    B, C, H, W = 2, 64, 16, 16
    reduction = 16

    x = jax.random.normal(k_x, (B, C, H, W), jnp.float32)
    module = SELayerPallas(C, reduction, key=k_w)

    out = jax.block_until_ready(module(x))
    ref = jax.block_until_ready(reference_forward(module, x))

    assert out.shape == (B, C, H, W)
    assert jnp.allclose(out, ref, atol=1e-4, rtol=1e-4), "mismatch vs reference"

    print("KERNEL_OK")
</pallas_src>

<mosaic_0001>
module attributes {stable_mosaic.version = 11 : i64} {
  func.func @_pool_mean_kernel(%arg0: i32, %arg1: memref<64x256xf32, #tpu.memory_space<vmem>>, %arg2: memref<64x1xf32, #tpu.memory_space<vmem>>) attributes {dimension_semantics = [#tpu.dimension_semantics<parallel>], iteration_bounds = array<i64: 2>, scalar_prefetch = 0 : i64, scratch_operands = 0 : i64, tpu.core_type = #tpu.core_type<tc>, window_params = [{transform_indices = @transform_0, window_bounds = array<i64: 64, 256>}, {transform_indices = @transform_1, window_bounds = array<i64: 64, 1>}]} {
    %c0 = arith.constant 0 : index
    %c0_0 = arith.constant 0 : index
    %0 = vector.load %arg1[%c0, %c0_0] : memref<64x256xf32, #tpu.memory_space<vmem>>, vector<64x256xf32>
    %cst = arith.constant dense<0.000000e+00> : vector<64xf32>
    %1 = vector.multi_reduction <add>, %0, %cst [1] : vector<64x256xf32> to vector<64xf32>
    %2 = vector.shape_cast %1 : vector<64xf32> to vector<64x1xf32>
    %cst_1 = arith.constant 3.906250e-03 : f32
    %3 = vector.broadcast %cst_1 : f32 to vector<64x1xf32>
    %4 = arith.mulf %2, %3 : vector<64x1xf32>
    %c0_2 = arith.constant 0 : index
    %c0_3 = arith.constant 0 : index
    %5 = vector.load %arg2[%c0_2, %c0_3] : memref<64x1xf32, #tpu.memory_space<vmem>>, vector<64x1xf32>
    tpu.vector_store %arg2[%c0_2, %c0_3], %4 {strides = array<i32>} : memref<64x1xf32, #tpu.memory_space<vmem>>, vector<64x1xf32>,
    return
  }
  func.func @transform_0(%arg0: i32) -> (i32, i32) {
    %c0_i32 = arith.constant 0 : i32
    %c0_i32_0 = arith.constant 0 : i32
    return %arg0, %c0_i32 : i32, i32
  }
  func.func @transform_1(%arg0: i32) -> (i32, i32) {
    %c0_i32 = arith.constant 0 : i32
    %c0_i32_0 = arith.constant 0 : i32
    return %arg0, %c0_i32 : i32, i32
  }
}

</mosaic_0001>

<bundles_post_ra>
// kernel: tpu_custom_call.1
= control target key start
LH: loop header
LB: loop body
LE: loop exit
PB: predicated region body
PF: predicated region fallthrough
CT: control target
= control target key end

     0   :  { %6 = vsyncpa [#allocation3], 0  ;;  %s506_s0 = inlined_call_operand.hbm [shape: f32[128,256], index: 0, kind: input, shape index: {}]   ;;  %s507_s1 = inlined_call_operand.vmem [shape: f32[128,1], index: 1, kind: output, shape index: {}]  }
   0x1   :  { %8 = vsyncpa [#allocation3 + $0x1], 0  ;;  %s398_s6 = smov 0   ;;  %s400_s7 = smov 0  }
   0x2   :  { %s402_s8 = smov 0   ;;  %s404_s9 = smov 0  }
   0x3 LB: > { %s264_s10 = sadd.s32 4294967295, %s383_s9   ;;  %s418_s11 = sadd.s32 1, %s383_s9   ;;  %s383_s9 = sphi %s404_s9, %s516_s9   ;;  %s379_s8 = sphi %s402_s8, %s515_s8   ;;  %s375_s7 = sphi %s400_s7, %s514_s7   ;;  %s371_s6 = sphi %s398_s6, %s513_s6  }
   0x4   : > { %s18_s12 = ssub.s32 %s383_s9, %s418_s11  ;;  %s21_s13 = sadd.s32 1, %s379_s8 }
   0x5   : > { %p19_p0 = scmp.eq.s32.totalorder %s18_s12, 0  ;;  %p28_p1 = scmp.ne.s32.totalorder %s379_s8, %s375_s7 }
   0x6   : > { %p29_p2 = scmp.eq.s32.totalorder %s383_s9, 0  ;;  %p34_p3 = scmp.ne.s32.totalorder %s375_s7, %s371_s6 }
   0x7   : > { %s428_s14 = scalar_select %p19_p0, %s379_s8, %s21_s13  }
   0x8   : > { %p30_p4 = por %p29_p2, %p28_p1  ;;  %p35_p5 = scmp.eq.s32.totalorder %s264_s10, 0 }
   0x9   : > { %p286_p6 = scmp.lt.s32.totalorder %s383_s9, 2  ;;  %s84_s16 = sand.u32 1, %s379_s8  }
   0xa   : > { %p433_p7 = por %p35_p5, %p34_p3  ;;  %s268_s17 = sshll.u32 %s84_s16, 7 }
   0xb   : > { %s279_s18 = sshll.u32 %s383_s9, 11  ;;  %s88_s22 = scalar_lea.vmem [#allocation2], %s268_s17 }
   0xc   : > { %s509_s15 = scalar_select %p433_p7, 1, 0 }
   0xd   : > { %s442_s21 = scalar_lea.hbm %s506_s0, %s279_s18  ;;  %s96_s23 = sshll.u32 %s88_s22, 4  ;;  %s444_s23 = int_to_ptr.vmem [resolvable:$true] %s96_s23 }
   0xe   : > { %p446_p8 = pnand %p286_p6, %p30_p4  ;;  %s451_s25 = scalar_lea.sflag [#allocation3], %s84_s16 }
   0xf   : > { %s321_s26 = scalar_lea.hbm %s442_s21, 2048  ;;  %s326_s29 = scalar_lea.hbm %s506_s0, 4096 }
  0x10   : > { %p322_p10 = scmp.ne.s32.totalorder %s442_s21, %s321_s26  ;;  %p323_p11 = pneg %p446_p8 }
  0x11   : > { %p327_p0 = scmp.lt.s32.totalorder %s442_s21, %s506_s0  ;;  %p328_p1 = scmp.lt.s32.totalorder %s326_s29, %s321_s26 }
  0x12   : > { %p324_p12 = pnand %p323_p11, %p322_p10 }
  0x13   : > { %p329_p2 = por %p328_p1, %p327_p0 }
  0x14   : > { %p325_p13 = pneg %p324_p12 }
  0x16   : > { %p330_p3 = pnand %p329_p2, %p325_p13 }
  0x18   : > { %333 = shalt.err (!%p330_p3)
}
  0x19   : > { %s334_s3 = scalar_lea.vmem %s444_s23, 2048  ;;  %s385_s4 = smov [#allocation2]  }
  0x1a   : > { %p335_p4 = scmp.ne.s32.totalorder %s444_s23, %s334_s3  ;;  %s339_s5 = sshll.u32 %s385_s4, 4  ;;  %s340_s5 = int_to_ptr.vmem [resolvable:$false] %s339_s5 }
  0x1b   : > { %s341_s6 = scalar_lea.vmem %s340_s5, 4096  ;;  %p342_p10 = scmp.lt.s32.totalorder %s444_s23, %s340_s5 }
  0x1c   : > { %p337_p5 = pnand %p335_p4, %p323_p11  ;;  %p343_p12 = scmp.lt.s32.totalorder %s341_s6, %s334_s3 }
  0x1e   : > { %p338_p6 = pneg %p337_p5  ;;  %p344_p9 = por %p343_p12, %p342_p10 }
  0x20   : > { %p345_p7 = pnand %p344_p9, %p338_p6 }
  0x22   : > { %348 = shalt.err (!%p345_p7)
}
  0x23   : > { %s386_s12 = smov 256   ;;  %s387_s13 = smov 16  }
  0x24   : > { %285 = dma.hbm_to_vmem [thread:$0]  (!%p446_p8), %s442_s21, 2048, %s444_s23, %s451_s25, %s386_s12, %s386_s12, %s387_s13  }
  0x25   : > { %p104_p11 = scmp.lt.s32.totalorder %s383_s9, 3  ;;  %p511_p13 = scmp.ge.s32.totalorder %s383_s9, 1 }
  0x27   : > { %p105_p0 = pnand %p511_p13, %p104_p11 }
  0x28   : > { %s110_s16 = sand.u32 (!%p105_p0), 1, %s375_s7   ;;  %p512_p7 = scmp.ne.s32.totalorder (!%p105_p0), %s509_s15, 0 }
  0x29   : > { %108 = sbr.rel (%p105_p0) target bundleno = 204 (0xcc), region = 24  ;;  %s273_s17 = sshll.u32 (!%p105_p0), %s110_s16, 7 }
  0x2a   : > { %s111_s18 = scalar_lea.sflag (!%p105_p0), [#allocation3], %s110_s16  ;;  %s114_s19 = scalar_lea.vmem (!%p105_p0), [#allocation2], %s273_s17 }
  0x2e   : > { %366 = dma.done.wait (%p512_p7), %s111_s18, 2048  }
  0x2f   : > { %368 = vsyncadd (%p512_p7), %s111_s18, 4294965248  ;;  %v144_v0 = vld [vmem:[%s114_s19 + $0x20] sm:$0xff]  ;;  %v145_v1 = vld [vmem:[%s114_s19 + $0x28] sm:$0xff]  ;;  %s274_s15 = sshll.u32 %s264_s10, 3  ;;  %vm188_vm0 = vcmask 7168  }
  0x30   : > { %v140_v2 = vld [vmem:[%s114_s19] sm:$0xff]  ;;  %v162_v3 = vadd.f32 %v145_v1, %v144_v0  ;;  %v141_v4 = vld [vmem:[%s114_s19 + $0x8] sm:$0xff]  ;;  %v146_v5 = vld [vmem:[%s114_s19 + $0x30] sm:$0xff]  ;;  %p135_p8 = scmp.lt.s32.totalorder %s274_s15, 15 }
  0x31   : > { %v147_v6 = vld [vmem:[%s114_s19 + $0x38] sm:$0xff]  ;;  %v156_v7 = vadd.f32 %v141_v4, %v140_v2  ;;  %v142_v8 = vld [vmem:[%s114_s19 + $0x10] sm:$0xff]  ;;  %v148_v14 = vld [vmem:[%s114_s19 + $0x40] sm:$0xff] }
  0x32   : > { %v143_v9 = vld [vmem:[%s114_s19 + $0x18] sm:$0xff]  ;;  %163 = vadd.xlane.f32.xlu1 %v162_v3  ;;  %v165_v10 = vadd.f32 %v147_v6, %v146_v5  ;;  %v150_v12 = vld [vmem:[%s114_s19 + $0x50] sm:$0xff]  ;;  %v149_v15 = vld [vmem:[%s114_s19 + $0x48] sm:$0xff]  ;;  %s518_s15 = smov (!%p135_p8, %s274_s15), 15 }
  0x33   : > { %157 = vadd.xlane.f32.xlu0 %v156_v7  ;;  %v159_v11 = vadd.f32 %v143_v9, %v142_v8  ;;  %v151_v13 = vld [vmem:[%s114_s19 + $0x58] sm:$0xff]  ;;  %v168_v17 = vadd.f32 %v149_v15, %v148_v14  ;;  %v154_v18 = vld [vmem:[%s114_s19 + $0x70] sm:$0xff]  ;;  %v152_v20 = vld [vmem:[%s114_s19 + $0x60] sm:$0xff]  ;;  %s275_s20 = sshll.u32 %s518_s15, 3 }
  0x34   : > { %v171_v16 = vadd.f32 %v151_v13, %v150_v12  ;;  %v155_v19 = vld [vmem:[%s114_s19 + $0x78] sm:$0xff]  ;;  %v153_v21 = vld [vmem:[%s114_s19 + $0x68] sm:$0xff]  ;;  %s138_s23 = scalar_lea.vmem %s507_s1, %s275_s20 }
  0x35   : > { %v177_v22 = vadd.f32 %v155_v19, %v154_v18  ;;  %v174_v23 = vadd.f32 %v153_v21, %v152_v20 }
  0x36   : > { %166 = vadd.xlane.f32.xlu1 %v165_v10 }
  0x37   : > { %160 = vadd.xlane.f32.xlu0 %v159_v11 }
  0x3a   : > { %172 = vadd.xlane.f32.xlu1 %v171_v16 }
  0x3b   : > { %169 = vadd.xlane.f32.xlu0 %v168_v17 }
  0x3e   : > { %178 = vadd.xlane.f32.xlu1 %v177_v22 }
  0x3f   : > { %175 = vadd.xlane.f32.xlu0 %v174_v23 }
  0xbb   : > { %v164_v24 = vpop.xlane.xlu1 %163 }
  0xbc   : > { %v182_v25 = vmul.f32 0.00390625, %v164_v24  ;;  %v158_v26 = vpop.xlane.xlu0 %157 }
  0xbd   : > { %v180_v27 = vmul.f32 0.00390625, %v158_v26 }
  0xbe   : > { %191 = vst.msk [vmem:[%s138_s23 + $0x10] sm:$0xff] %vm188_vm0, %v182_v25 }
  0xbf   : > { %189 = vst.msk [vmem:[%s138_s23] sm:$0xff] %vm188_vm0, %v180_v27  ;;  %v167_v28 = vpop.xlane.xlu1 %166 }
  0xc0   : > { %v183_v29 = vmul.f32 0.00390625, %v167_v28  ;;  %v161_v30 = vpop.xlane.xlu0 %160 }
  0xc1   : > { %v181_v31 = vmul.f32 0.00390625, %v161_v30 }
  0xc2   : > { %192 = vst.msk [vmem:[%s138_s23 + $0x18] sm:$0xff] %vm188_vm0, %v183_v29 }
  0xc3   : > { %190 = vst.msk [vmem:[%s138_s23 + $0x8] sm:$0xff] %vm188_vm0, %v181_v31  ;;  %v173_v32 = vpop.xlane.xlu1 %172 }
  0xc4   : > { %v185_v33 = vmul.f32 0.00390625, %v173_v32  ;;  %v170_v34 = vpop.xlane.xlu0 %169 }
  0xc5   : > { %v184_v35 = vmul.f32 0.00390625, %v170_v34 }
  0xc6   : > { %194 = vst.msk [vmem:[%s138_s23 + $0x28] sm:$0xff] %vm188_vm0, %v185_v33 }
  0xc7   : > { %193 = vst.msk [vmem:[%s138_s23 + $0x20] sm:$0xff] %vm188_vm0, %v184_v35  ;;  %v179_v36 = vpop.xlane.xlu1 %178 }
  0xc8   : > { %v187_v37 = vmul.f32 0.00390625, %v179_v36  ;;  %v176_v38 = vpop.xlane.xlu0 %175 }
  0xc9   : > { %v186_v39 = vmul.f32 0.00390625, %v176_v38 }
  0xca   : > { %196 = vst.msk [vmem:[%s138_s23 + $0x38] sm:$0xff] %vm188_vm0, %v187_v37 }
  0xcb   : > { %195 = vst.msk [vmem:[%s138_s23 + $0x30] sm:$0xff] %vm188_vm0, %v186_v39 }
  0xcc PF: > { %p11_p9 = scmp.ge.s32.totalorder %s418_s11, 4   ;;  %s513_s6 = smov %s375_s7 }
  0xcd   : > { %s514_s7 = smov %s379_s8  ;;  %s515_s8 = smov %s428_s14 }
  0xce   : > { %s516_s9 = smov %s418_s11  ;;  %13 = sbr.rel (!%p11_p9) target bundleno = 3 (0x3), region = 64 }
  0xd3   :  { %219 = vsyncpa [#allocation3], 1 }
  0xd4   :  { %221 = vsyncpa [#allocation3 + $0x1], 1 }

</bundles_post_ra>
